<compile_context>
chip_gen: v5e
topology: v5e:2x2
jax: 0.10.0
libtpu: 0.0.40
codegen_flags: <defaults>
</compile_context>

<pallas_src>
import functools

import jax
import jax.numpy as jnp
from jax.experimental import pallas as pl
from jax.experimental.pallas import tpu as pltpu

_NEG_LARGE = -1e30  # padded logit lanes -> exp() underflows to 0 in softmax


def _round_up(n, m):
    return (n + m - 1) // m * m


def _cdiv(a, b):
    return (a + b - 1) // b


def _spec(shape, index_map, buffers=None):
    """BlockSpec with optional explicit buffer count (fallback to default)."""
    if buffers is None:
        return pl.BlockSpec(shape, index_map)
    try:
        return pl.BlockSpec(shape, index_map, pipeline_mode=pl.Buffered(buffers))
    except Exception:
        return pl.BlockSpec(shape, index_map)


def _mlp_kernel(n_hidden, x_ref, *refs):
    """Fused MLP forward for one batch tile.

    refs layout (after x_ref):
        refs[2*i], refs[2*i+1]              : W_i (Dp_i, Dp_{i+1}), b_i (1, Dp_{i+1}) f32
        refs[2*n_hidden], refs[2*n_hidden+1]: W_out (Dp_h, Dp_out), b_out (1, Dp_out) f32
        refs[-1]                            : out_ref (TB, Dp_out)
    """
    out_ref = refs[-1]
    params = refs[:-1]

    h = x_ref[...]  # compute dtype (bf16 by default)

    # Hidden layers: Linear -> ReLU (dropout is identity at inference).
    for i in range(n_hidden):
        w = params[2 * i][...]
        b = params[2 * i + 1][...]                       # f32
        # Operands share the MXU dtype; accumulate in f32.
        acc = jnp.dot(h, w, preferred_element_type=jnp.float32) + b
        # Bias add + ReLU in f32 on the accumulator; cast once as the last op.
        h = jnp.maximum(acc, 0.0).astype(w.dtype)
        # TODO(synk): training-mode dropout (random mask + 1/(1-p) scale) omitted;
        # eval-mode dropout is the identity, matching model.eval().

    # Output layer (lane-dense padded head; padded bias lanes = -1e30).
    w_out = params[2 * n_hidden][...]
    b_out = params[2 * n_hidden + 1][...]
    logits = jnp.dot(h, w_out, preferred_element_type=jnp.float32) + b_out

    # Numerically stable log_softmax over the feature axis (f32).  Padded
    # lanes hold ~-1e30 so they never win the max and add 0 to the sum.
    m = jnp.max(logits, axis=-1, keepdims=True)
    shifted = logits - m
    lse = jnp.log(jnp.sum(jnp.exp(shifted), axis=-1, keepdims=True))
    out_ref[...] = (shifted - lse).astype(out_ref.dtype)


def classifier_forward(x, hidden_params, out_params, *, tile_batch=1024,
                       compute_dtype=jnp.bfloat16, out_dtype=jnp.float32):
    """x: (B, D_in).  hidden_params: list of (W, b).  out_params: (W, b).

    Matmul operands run in `compute_dtype` (bf16 default -> MXU native rate),
    accumulation and log_softmax are always f32.
    """
    B, D_in = x.shape
    n_hidden = len(hidden_params)
    w_out, b_out = out_params
    out_dim = w_out.shape[1]

    # ---- pad every feature dim to a lane-dense multiple of 128 -------------
    D_in_pad = _round_up(D_in, 128)
    hid_pad = [_round_up(w.shape[1], 128) for w, _ in hidden_params]
    out_pad = _round_up(out_dim, 128)

    flat_params = []
    prev_pad = D_in_pad
    for (w, b), dp in zip(hidden_params, hid_pad):
        wp = jnp.pad(w, ((0, prev_pad - w.shape[0]), (0, dp - w.shape[1])))
        bp = jnp.pad(b.reshape(1, -1), ((0, 0), (0, dp - w.shape[1])))
        flat_params += [wp.astype(compute_dtype), bp.astype(jnp.float32)]
        prev_pad = dp
    wop = jnp.pad(w_out, ((0, prev_pad - w_out.shape[0]), (0, out_pad - out_dim)))
    bop = jnp.pad(b_out.reshape(1, -1), ((0, 0), (0, out_pad - out_dim)),
                  constant_values=_NEG_LARGE)
    flat_params += [wop.astype(compute_dtype), bop.astype(jnp.float32)]

    x_c = x.astype(compute_dtype)
    if D_in_pad != D_in:
        x_c = jnp.pad(x_c, ((0, 0), (0, D_in_pad - D_in)))

    # ---- VMEM budget & batch-tile sizing ------------------------------------
    c_item = jnp.dtype(compute_dtype).itemsize
    o_item = jnp.dtype(out_dtype).itemsize
    granule = max(8, 32 // c_item, 32 // o_item)   # sublane granule (f32:8, bf16:16)

    try:
        vmem_cap = int(pltpu.get_tpu_info().vmem_capacity_bytes)
    except Exception:
        vmem_cap = 64 * 1024 * 1024                # conservative fallback
    vmem_limit = int(vmem_cap * 0.75)              # headroom for compiler scratch

    weight_bytes = sum(int(p.size) * p.dtype.itemsize for p in flat_params)
    widths = [D_in_pad] + hid_pad + [out_pad]
    # per-row VMEM: x tile (3 buffers) + out tile (2 buffers) + per-layer
    # f32 accumulator & casted activation (x2 slack for compiler temps).
    per_row = (D_in_pad * c_item * 3
               + out_pad * o_item * 2
               + 2 * sum((4 + c_item) * w for w in widths))
    budget_rows = max(granule, (vmem_limit - weight_bytes) // max(per_row, 1))

    TB = min(int(tile_batch), int(budget_rows), _round_up(B, granule))
    TB = max(granule, (TB // granule) * granule)
    # Keep the tile count but shrink TB so B_pad hugs B (minimal padded rows).
    n_tiles = _cdiv(B, TB)
    TB = _round_up(_cdiv(B, n_tiles), granule)
    B_pad = n_tiles * TB

    if B_pad != B:
        x_c = jnp.pad(x_c, ((0, B_pad - B), (0, 0)))
    grid = (B_pad // TB,)

    # ---- specs ---------------------------------------------------------------
    x_buffers = 3 if grid[0] > 2 else 2            # deepen only when it can help
    in_specs = [_spec((TB, D_in_pad), lambda i: (i, 0), buffers=x_buffers)]
    for p in flat_params:
        # Constant index_map -> DMA'd once; single buffer halves weight VMEM.
        in_specs.append(_spec(p.shape, lambda i: (0, 0), buffers=1))
    out_specs = pl.BlockSpec((TB, out_pad), lambda i: (i, 0))

    # ---- advisory cost estimate ---------------------------------------------
    flops = sum(2 * B_pad * widths[i] * widths[i + 1] for i in range(len(widths) - 1))
    bytes_accessed = (int(x_c.size) * c_item
                      + weight_bytes
                      + B_pad * out_pad * o_item)

    kernel = functools.partial(_mlp_kernel, n_hidden)
    out = pl.pallas_call(
        kernel,
        out_shape=jax.ShapeDtypeStruct((B_pad, out_pad), out_dtype),
        grid=grid,
        in_specs=in_specs,
        out_specs=out_specs,
        compiler_params=pltpu.CompilerParams(
            dimension_semantics=("parallel",),     # batch rows are independent
            vmem_limit_bytes=vmem_limit,
        ),
        cost_estimate=pl.CostEstimate(
            flops=flops,
            transcendentals=B_pad * out_pad,
            bytes_accessed=bytes_accessed,
        ),
    )(x_c, *flat_params)

    return out[:B, :out_dim]


def init_linear(key, fan_in, fan_out):
    """PyTorch nn.Linear default init: U(-1/sqrt(fan_in), 1/sqrt(fan_in))."""
    kw, kb = jax.random.split(key)
    bound = 1.0 / jnp.sqrt(jnp.float32(fan_in))
    w = jax.random.uniform(kw, (fan_in, fan_out), jnp.float32, -bound, bound)
    b = jax.random.uniform(kb, (fan_out,), jnp.float32, -bound, bound)
    return w, b


def reference_forward(x, hidden_params, out_params):
    h = x
    for w, b in hidden_params:
        h = jnp.maximum(h @ w + b, 0.0)
    w_out, b_out = out_params
    logits = h @ w_out + b_out
    return jax.nn.log_softmax(logits, axis=1)


if __name__ == "__main__":
    # Small shapes consistent with the module:
    #   create_classifier(input_size=32, output_size=16, hidden_layers=[64, 32])
    batch = 8
    input_size = 32
    hidden_layers = [64, 32]
    output_size = 16

    key = jax.random.PRNGKey(0)
    keys = jax.random.split(key, len(hidden_layers) + 2)

    x = jax.random.normal(keys[0], (batch, input_size), jnp.float32)

    hidden_params = []
    fan_in = input_size
    for i, h in enumerate(hidden_layers):
        hidden_params.append(init_linear(keys[1 + i], fan_in, h))
        fan_in = h
    out_params = init_linear(keys[-1], fan_in, output_size)

    ref = reference_forward(x, hidden_params, out_params)

    # f32 MXU path: tight tolerance vs the f32 reference.
    out_f32 = classifier_forward(x, hidden_params, out_params,
                                 compute_dtype=jnp.float32)
    out_f32 = jax.block_until_ready(out_f32)
    assert out_f32.shape == (batch, output_size)
    assert jnp.allclose(out_f32, ref, atol=1e-5, rtol=1e-5), "f32 mismatch vs reference"

    # bf16 MXU path (default, MXU-native): looser tolerance for operand rounding.
    out_bf16 = classifier_forward(x, hidden_params, out_params)
    out_bf16 = jax.block_until_ready(out_bf16)
    assert out_bf16.shape == (batch, output_size)
    assert jnp.allclose(out_bf16, ref, atol=5e-2, rtol=5e-2), "bf16 mismatch vs reference"

    print("KERNEL_OK")
</pallas_src>

<mosaic_0001>
module attributes {stable_mosaic.version = 11 : i64} {
  func.func @_mlp_kernel(%arg0: i32, %arg1: memref<8x128xf32, #tpu.memory_space<vmem>>, %arg2: memref<128x128xf32, #tpu.memory_space<vmem>>, %arg3: memref<1x128xf32, #tpu.memory_space<vmem>>, %arg4: memref<128x128xf32, #tpu.memory_space<vmem>>, %arg5: memref<1x128xf32, #tpu.memory_space<vmem>>, %arg6: memref<128x128xf32, #tpu.memory_space<vmem>>, %arg7: memref<1x128xf32, #tpu.memory_space<vmem>>, %arg8: memref<8x128xf32, #tpu.memory_space<vmem>>) attributes {dimension_semantics = [#tpu.dimension_semantics<parallel>], iteration_bounds = array<i64: 1>, scalar_prefetch = 0 : i64, scratch_operands = 0 : i64, tpu.core_type = #tpu.core_type<tc>, window_params = [{pipeline_mode = #tpu.pipeline_mode<double_buffered>, transform_indices = @transform_0, window_bounds = array<i64: 8, 128>}, {pipeline_mode = #tpu.pipeline_mode<synchronous>, transform_indices = @transform_1, window_bounds = array<i64: 128, 128>}, {pipeline_mode = #tpu.pipeline_mode<synchronous>, transform_indices = @transform_2, window_bounds = array<i64: 1, 128>}, {pipeline_mode = #tpu.pipeline_mode<synchronous>, transform_indices = @transform_3, window_bounds = array<i64: 128, 128>}, {pipeline_mode = #tpu.pipeline_mode<synchronous>, transform_indices = @transform_4, window_bounds = array<i64: 1, 128>}, {pipeline_mode = #tpu.pipeline_mode<synchronous>, transform_indices = @transform_5, window_bounds = array<i64: 128, 128>}, {pipeline_mode = #tpu.pipeline_mode<synchronous>, transform_indices = @transform_6, window_bounds = array<i64: 1, 128>}, {transform_indices = @transform_7, window_bounds = array<i64: 8, 128>}]} {
    %c0 = arith.constant 0 : index
    %c0_0 = arith.constant 0 : index
    %0 = vector.load %arg1[%c0, %c0_0] : memref<8x128xf32, #tpu.memory_space<vmem>>, vector<8x128xf32>
    %c0_1 = arith.constant 0 : index
    %c0_2 = arith.constant 0 : index
    %1 = vector.load %arg2[%c0_1, %c0_2] : memref<128x128xf32, #tpu.memory_space<vmem>>, vector<128x128xf32>
    %c0_3 = arith.constant 0 : index
    %c0_4 = arith.constant 0 : index
    %2 = vector.load %arg3[%c0_3, %c0_4] : memref<1x128xf32, #tpu.memory_space<vmem>>, vector<1x128xf32>
    %cst = arith.constant dense<0.000000e+00> : vector<8x128xf32>
    %3 = tpu.matmul %0, %1, %cst {dimension_numbers = #tpu.dot_dimension_numbers<[1], [0], [0], [1], [0, 0, 1, 1], [], []>} : vector<8x128xf32>, vector<128x128xf32>, vector<8x128xf32> -> vector<8x128xf32>
    %4 = vector.broadcast %2 : vector<1x128xf32> to vector<8x128xf32>
    %5 = arith.addf %3, %4 : vector<8x128xf32>
    %cst_5 = arith.constant 0.000000e+00 : f32
    %6 = vector.broadcast %cst_5 : f32 to vector<8x128xf32>
    %7 = arith.maximumf %5, %6 : vector<8x128xf32>
    %c0_6 = arith.constant 0 : index
    %c0_7 = arith.constant 0 : index
    %8 = vector.load %arg4[%c0_6, %c0_7] : memref<128x128xf32, #tpu.memory_space<vmem>>, vector<128x128xf32>
    %c0_8 = arith.constant 0 : index
    %c0_9 = arith.constant 0 : index
    %9 = vector.load %arg5[%c0_8, %c0_9] : memref<1x128xf32, #tpu.memory_space<vmem>>, vector<1x128xf32>
    %cst_10 = arith.constant dense<0.000000e+00> : vector<8x128xf32>
    %10 = tpu.matmul %7, %8, %cst_10 {dimension_numbers = #tpu.dot_dimension_numbers<[1], [0], [0], [1], [0, 0, 1, 1], [], []>} : vector<8x128xf32>, vector<128x128xf32>, vector<8x128xf32> -> vector<8x128xf32>
    %11 = vector.broadcast %9 : vector<1x128xf32> to vector<8x128xf32>
    %12 = arith.addf %10, %11 : vector<8x128xf32>
    %cst_11 = arith.constant 0.000000e+00 : f32
    %13 = vector.broadcast %cst_11 : f32 to vector<8x128xf32>
    %14 = arith.maximumf %12, %13 : vector<8x128xf32>
    %c0_12 = arith.constant 0 : index
    %c0_13 = arith.constant 0 : index
    %15 = vector.load %arg6[%c0_12, %c0_13] : memref<128x128xf32, #tpu.memory_space<vmem>>, vector<128x128xf32>
    %c0_14 = arith.constant 0 : index
    %c0_15 = arith.constant 0 : index
    %16 = vector.load %arg7[%c0_14, %c0_15] : memref<1x128xf32, #tpu.memory_space<vmem>>, vector<1x128xf32>
    %cst_16 = arith.constant dense<0.000000e+00> : vector<8x128xf32>
    %17 = tpu.matmul %14, %15, %cst_16 {dimension_numbers = #tpu.dot_dimension_numbers<[1], [0], [0], [1], [0, 0, 1, 1], [], []>} : vector<8x128xf32>, vector<128x128xf32>, vector<8x128xf32> -> vector<8x128xf32>
    %18 = vector.broadcast %16 : vector<1x128xf32> to vector<8x128xf32>
    %19 = arith.addf %17, %18 : vector<8x128xf32>
    %cst_17 = arith.constant dense<0xFF800000> : vector<8xf32>
    %20 = vector.multi_reduction <maximumf>, %19, %cst_17 [1] : vector<8x128xf32> to vector<8xf32>
    %21 = vector.shape_cast %20 : vector<8xf32> to vector<8x1xf32>
    %22 = vector.broadcast %21 : vector<8x1xf32> to vector<8x128xf32>
    %23 = arith.subf %19, %22 : vector<8x128xf32>
    %24 = math.exp %23 : vector<8x128xf32>
    %cst_18 = arith.constant dense<0.000000e+00> : vector<8xf32>
    %25 = vector.multi_reduction <add>, %24, %cst_18 [1] : vector<8x128xf32> to vector<8xf32>
    %26 = vector.shape_cast %25 : vector<8xf32> to vector<8x1xf32>
    %27 = math.log %26 : vector<8x1xf32>
    %28 = vector.broadcast %27 : vector<8x1xf32> to vector<8x128xf32>
    %29 = arith.subf %23, %28 : vector<8x128xf32>
    %c0_19 = arith.constant 0 : index
    %c0_20 = arith.constant 0 : index
    %30 = vector.load %arg8[%c0_19, %c0_20] : memref<8x128xf32, #tpu.memory_space<vmem>>, vector<8x128xf32>
    tpu.vector_store %arg8[%c0_19, %c0_20], %29 {strides = array<i32>} : memref<8x128xf32, #tpu.memory_space<vmem>>, vector<8x128xf32>,
    return
  }
  func.func @transform_0(%arg0: i32) -> (i32, i32) {
    %c0_i32 = arith.constant 0 : i32
    %c0_i32_0 = arith.constant 0 : i32
    return %arg0, %c0_i32 : i32, i32
  }
  func.func @transform_1(%arg0: i32) -> (i32, i32) {
    %c0_i32 = arith.constant 0 : i32
    %c0_i32_0 = arith.constant 0 : i32
    %c0_i32_1 = arith.constant 0 : i32
    return %c0_i32, %c0_i32_0 : i32, i32
  }
  func.func @transform_2(%arg0: i32) -> (i32, i32) {
    %c0_i32 = arith.constant 0 : i32
    %c0_i32_0 = arith.constant 0 : i32
    %c0_i32_1 = arith.constant 0 : i32
    return %c0_i32, %c0_i32_0 : i32, i32
  }
  func.func @transform_3(%arg0: i32) -> (i32, i32) {
    %c0_i32 = arith.constant 0 : i32
    %c0_i32_0 = arith.constant 0 : i32
    %c0_i32_1 = arith.constant 0 : i32
    return %c0_i32, %c0_i32_0 : i32, i32
  }
  func.func @transform_4(%arg0: i32) -> (i32, i32) {
    %c0_i32 = arith.constant 0 : i32
    %c0_i32_0 = arith.constant 0 : i32
    %c0_i32_1 = arith.constant 0 : i32
    return %c0_i32, %c0_i32_0 : i32, i32
  }
  func.func @transform_5(%arg0: i32) -> (i32, i32) {
    %c0_i32 = arith.constant 0 : i32
    %c0_i32_0 = arith.constant 0 : i32
    %c0_i32_1 = arith.constant 0 : i32
    return %c0_i32, %c0_i32_0 : i32, i32
  }
  func.func @transform_6(%arg0: i32) -> (i32, i32) {
    %c0_i32 = arith.constant 0 : i32
    %c0_i32_0 = arith.constant 0 : i32
    %c0_i32_1 = arith.constant 0 : i32
    return %c0_i32, %c0_i32_0 : i32, i32
  }
  func.func @transform_7(%arg0: i32) -> (i32, i32) {
    %c0_i32 = arith.constant 0 : i32
    %c0_i32_0 = arith.constant 0 : i32
    return %arg0, %c0_i32 : i32, i32
  }
}

</mosaic_0001>

<bundles_post_ra>
// kernel: tpu_custom_call.1
= control target key start
LH: loop header
LB: loop body
LE: loop exit
PB: predicated region body
PF: predicated region fallthrough
CT: control target
= control target key end

     0   :  { %12 = vsyncpa [#allocation3], 0  ;;  %s454_s0 = inlined_call_operand.hbm [shape: f32[8,128], index: 0, kind: input, shape index: {}]   ;;  %s455_s1 = inlined_call_operand.hbm [shape: f32[128,128], index: 1, kind: input, shape index: {}]   ;;  %s456_s2 = inlined_call_operand.vmem [shape: f32[1,128], index: 2, kind: input, shape index: {}]   ;;  %s457_s3 = inlined_call_operand.hbm [shape: f32[128,128], index: 3, kind: input, shape index: {}]   ;;  %s458_s4 = inlined_call_operand.vmem [shape: f32[1,128], index: 4, kind: input, shape index: {}]   ;;  %s459_s5 = inlined_call_operand.hbm [shape: f32[128,128], index: 5, kind: input, shape index: {}]   ;;  %s460_s6 = inlined_call_operand.vmem [shape: f32[1,128], index: 6, kind: input, shape index: {}]   ;;  %s461_s7 = inlined_call_operand.hbm [shape: f32[8,128], index: 7, kind: output, shape index: {}]  }
   0x1   :  { %13 = vsyncpa [#allocation6], 0 }
   0x2   :  { %14 = vsyncpa [#allocation9], 0  ;;  %s31_s26 = sshll.u32 %s455_s1, 4  ;;  %s32_s26 = int_to_ptr.hbm [resolvable:$true] %s31_s26 }
   0x3   :  { %15 = vsyncpa [#allocation4], 0  ;;  %s383_s27 = smov [#allocation5]   ;;  %s21_s8 = sshll.u32 %s454_s0, 4  ;;  %s22_s8 = int_to_ptr.hbm [resolvable:$true] %s21_s8 }
   0x4   :  { %s33_s28 = sshll.u32 %s383_s27, 4  ;;  %s384_s9 = smov 128   ;;  %s34_s28 = int_to_ptr.vmem [resolvable:$true] %s33_s28 }
   0x5   :  { %s385_s10 = smov 8   ;;  %s386_s11 = smov [#allocation2]  }
   0x6   :  { %39 = dma.hbm_to_vmem [thread:$0]  %s32_s26, 2048, %s34_s28, [#allocation6], %s384_s9, %s384_s9, %s385_s10  }
   0x7   :  { %s23_s12 = sshll.u32 %s386_s11, 4  ;;  %s46_s15 = sshll.u32 %s457_s3, 4  ;;  %s24_s12 = int_to_ptr.vmem [resolvable:$true] %s23_s12  ;;  %s47_s15 = int_to_ptr.hbm [resolvable:$true] %s46_s15 }
   0x8   :  { %26 = dma.hbm_to_vmem [thread:$0]  %s22_s8, 128, %s24_s12, [#allocation3]  }
   0x9   :  { %s61_s17 = sshll.u32 %s459_s5, 4  ;;  %s387_s18 = smov [#allocation7]   ;;  %s62_s17 = int_to_ptr.hbm [resolvable:$true] %s61_s17 }
   0xa   :  { %s48_s19 = sshll.u32 %s387_s18, 4  ;;  %s388_s0 = smov [#allocation8]   ;;  %s49_s19 = int_to_ptr.vmem [resolvable:$true] %s48_s19 }
   0xb   :  { %54 = dma.hbm_to_vmem [thread:$0]  %s47_s15, 2048, %s49_s19, [#allocation6], %s384_s9, %s384_s9, %s385_s10  }
   0xc   :  { %s63_s20 = sshll.u32 %s388_s0, 4  ;;  %s64_s20 = int_to_ptr.vmem [resolvable:$true] %s63_s20 }
   0xd   :  { %69 = dma.hbm_to_vmem [thread:$0]  %s62_s17, 2048, %s64_s20, [#allocation9], %s384_s9, %s384_s9, %s385_s10  }
   0xe   :  { %375 = dma.done.wait [#allocation3], 128  }
   0xf   :  { %376 = vsyncadd [#allocation3], 4294967168 }
  0x10   :  { %377 = dma.done.wait [#allocation6], 4096  }
  0x11   :  { %378 = vsyncadd [#allocation6], 4294963200 }
  0x12   :  { %379 = dma.done.wait [#allocation9], 2048  }
  0x13   :  { %380 = vsyncadd [#allocation9], 4294965248  ;;  %v104_v0 = vld [vmem:[#allocation5 + $0x78] sm:$0xff]  ;;  %v103_v1 = vld [vmem:[#allocation5 + $0x70] sm:$0xff]  ;;  %s229_s27 = sshll.u32 %s461_s7, 4  ;;  %s230_s27 = int_to_ptr.hbm [resolvable:$true] %s229_s27 }
  0x14   :  { %109 = vmatpush.msra.mxu0 %v104_v0  ;;  %v102_v2 = vld [vmem:[#allocation5 + $0x68] sm:$0xff]  ;;  %v101_v3 = vld [vmem:[#allocation5 + $0x60] sm:$0xff]  ;;  %v145_v4 = vld [vmem:[#allocation7 + $0x78] sm:$0xff] }
  0x15   :  { %v100_v5 = vld [vmem:[#allocation5 + $0x58] sm:$0xff]  ;;  %150 = vmatpush.msra.mxu1 %v145_v4  ;;  %v144_v6 = vld [vmem:[#allocation7 + $0x70] sm:$0xff]  ;;  %v143_v7 = vld [vmem:[#allocation7 + $0x68] sm:$0xff] }
  0x16   :  { %110 = vmatpush.msra.mxu0 %v103_v1  ;;  %v99_v8 = vld [vmem:[#allocation5 + $0x50] sm:$0xff]  ;;  %v142_v9 = vld [vmem:[#allocation7 + $0x60] sm:$0xff]  ;;  %v98_v10 = vld [vmem:[#allocation5 + $0x48] sm:$0xff] }
  0x17   :  { %151 = vmatpush.msra.mxu1 %v144_v6  ;;  %v141_v11 = vld [vmem:[#allocation7 + $0x58] sm:$0xff]  ;;  %v97_v12 = vld [vmem:[#allocation5 + $0x40] sm:$0xff]  ;;  %v140_v13 = vld [vmem:[#allocation7 + $0x50] sm:$0xff] }
  0x18   :  { %111 = vmatpush.msra.mxu0 %v102_v2  ;;  %v96_v14 = vld [vmem:[#allocation5 + $0x38] sm:$0xff]  ;;  %v139_v15 = vld [vmem:[#allocation7 + $0x48] sm:$0xff]  ;;  %v95_v16 = vld [vmem:[#allocation5 + $0x30] sm:$0xff] }
  0x19   :  { %152 = vmatpush.msra.mxu1 %v143_v7  ;;  %v138_v17 = vld [vmem:[#allocation7 + $0x40] sm:$0xff]  ;;  %v94_v18 = vld [vmem:[#allocation5 + $0x28] sm:$0xff]  ;;  %v137_v19 = vld [vmem:[#allocation7 + $0x38] sm:$0xff] }
  0x1a   :  { %112 = vmatpush.msra.mxu0 %v101_v3  ;;  %v93_v20 = vld [vmem:[#allocation5 + $0x20] sm:$0xff]  ;;  %v136_v21 = vld [vmem:[#allocation7 + $0x30] sm:$0xff]  ;;  %v92_v22 = vld [vmem:[#allocation5 + $0x18] sm:$0xff] }
  0x1b   :  { %153 = vmatpush.msra.mxu1 %v142_v9  ;;  %v135_v23 = vld [vmem:[#allocation7 + $0x28] sm:$0xff]  ;;  %v91_v24 = vld [vmem:[#allocation5 + $0x10] sm:$0xff]  ;;  %v134_v25 = vld [vmem:[#allocation7 + $0x20] sm:$0xff] }
  0x1c   :  { %113 = vmatpush.msra.mxu0 %v100_v5  ;;  %v90_v26 = vld [vmem:[#allocation5 + $0x8] sm:$0xff]  ;;  %v133_v27 = vld [vmem:[#allocation7 + $0x18] sm:$0xff]  ;;  %v89_v28 = vld [vmem:[#allocation5] sm:$0xff] }
  0x1d   :  { %154 = vmatpush.msra.mxu1 %v141_v11  ;;  %v88_v29 = vld [vmem:[#allocation2] sm:$0xff]  ;;  %v132_v30 = vld [vmem:[#allocation7 + $0x10] sm:$0xff]  ;;  %v131_v31 = vld [vmem:[#allocation7 + $0x8] sm:$0xff] }
  0x1e   :  { %114 = vmatpush.msra.mxu0 %v99_v8  ;;  %v130_v32 = vld [vmem:[#allocation7] sm:$0xff]  ;;  %v186_v33 = vld [vmem:[#allocation8 + $0x78] sm:$0xff]  ;;  %v185_v34 = vld [vmem:[#allocation8 + $0x70] sm:$0xff] }
  0x1f   :  { %155 = vmatpush.msra.mxu1 %v140_v13  ;;  %191 = vmatpush.msra.mxu2 %v186_v33  ;;  %v184_v35 = vld [vmem:[#allocation8 + $0x68] sm:$0xff]  ;;  %v183_v36 = vld [vmem:[#allocation8 + $0x60] sm:$0xff]  ;;  %v182_v37 = vld [vmem:[#allocation8 + $0x58] sm:$0xff] }
  0x20   :  { %115 = vmatpush.msra.mxu0 %v98_v10  ;;  %v181_v38 = vld [vmem:[#allocation8 + $0x50] sm:$0xff]  ;;  %v180_v39 = vld [vmem:[#allocation8 + $0x48] sm:$0xff]  ;;  %v179_v40 = vld [vmem:[#allocation8 + $0x40] sm:$0xff] }
  0x21   :  { %156 = vmatpush.msra.mxu1 %v139_v15  ;;  %192 = vmatpush.msra.mxu2 %v185_v34  ;;  %v178_v41 = vld [vmem:[#allocation8 + $0x38] sm:$0xff]  ;;  %v177_v42 = vld [vmem:[#allocation8 + $0x30] sm:$0xff]  ;;  %v176_v43 = vld [vmem:[#allocation8 + $0x28] sm:$0xff] }
  0x22   :  { %116 = vmatpush.msra.mxu0 %v97_v12  ;;  %v175_v44 = vld [vmem:[#allocation8 + $0x20] sm:$0xff]  ;;  %v174_v45 = vld [vmem:[#allocation8 + $0x18] sm:$0xff]  ;;  %v173_v50 = vld [vmem:[#allocation8 + $0x10] sm:$0xff] }
  0x23   :  { %157 = vmatpush.msra.mxu1 %v138_v17  ;;  %193 = vmatpush.msra.mxu2 %v184_v35  ;;  %v248_v46 = vld [vmem:[%s456_s2] ss:$0 sm:$0xff]  ;;  %v172_v51 = vld [vmem:[#allocation8 + $0x8] sm:$0xff]  ;;  %v171_v52 = vld [vmem:[#allocation8] sm:$0xff] }
  0x24   :  { %117 = vmatpush.msra.mxu0 %v96_v14  ;;  %v249_v53 = vld [vmem:[%s458_s4] ss:$0 sm:$0xff]  ;;  %s389_s4 = smov [#allocation10]  }
  0x25   :  { %158 = vmatpush.msra.mxu1 %v137_v19  ;;  %194 = vmatpush.msra.mxu2 %v183_v36  ;;  %v250_v57 = vld [vmem:[%s460_s6] ss:$0 sm:$0xff]  ;;  %s227_s24 = sshll.u32 %s389_s4, 4  ;;  %s228_s24 = int_to_ptr.vmem [resolvable:$true] %s227_s24 }
  0x26   :  { %118 = vmatpush.msra.mxu0 %v95_v16 }
  0x27   :  { %159 = vmatpush.msra.mxu1 %v136_v21  ;;  %195 = vmatpush.msra.mxu2 %v182_v37 }
  0x28   :  { %119 = vmatpush.msra.mxu0 %v94_v18 }
  0x29   :  { %160 = vmatpush.msra.mxu1 %v135_v23  ;;  %196 = vmatpush.msra.mxu2 %v181_v38 }
  0x2a   :  { %120 = vmatpush.msra.mxu0 %v93_v20 }
  0x2b   :  { %161 = vmatpush.msra.mxu1 %v134_v25  ;;  %197 = vmatpush.msra.mxu2 %v180_v39 }
  0x2c   :  { %121 = vmatpush.msra.mxu0 %v92_v22 }
  0x2d   :  { %162 = vmatpush.msra.mxu1 %v133_v27  ;;  %198 = vmatpush.msra.mxu2 %v179_v40 }
  0x2e   :  { %122 = vmatpush.msra.mxu0 %v91_v24 }
  0x2f   :  { %163 = vmatpush.msra.mxu1 %v132_v30  ;;  %199 = vmatpush.msra.mxu2 %v178_v41 }
  0x30   :  { %123 = vmatpush.msra.mxu0 %v90_v26 }
  0x31   :  { %164 = vmatpush.msra.mxu1 %v131_v31  ;;  %200 = vmatpush.msra.mxu2 %v177_v42 }
  0x32   :  { %124 = vmatpush.msra.mxu0 %v89_v28 }
  0x33   :  { %125 = vmatmul.f32.vlgmr.msra.gmra.mxu0 %v88_v29  ;;  %165 = vmatpush.msra.mxu1 %v130_v32 }
  0x34   :  { %201 = vmatpush.msra.mxu2 %v176_v43 }
  0x36   :  { %202 = vmatpush.msra.mxu2 %v175_v44 }
  0x38   :  { %203 = vmatpush.msra.mxu2 %v174_v45 }
  0x3a   :  { %204 = vmatpush.msra.mxu2 %v173_v50 }
  0x3c   :  { %205 = vmatpush.msra.mxu2 %v172_v51 }
  0x3e   :  { %206 = vmatpush.msra.mxu2 %v171_v52 }
  0xb0   :  { %v126_v47 = vpop.f32.mrf.mxu0 }
  0xb1   :  { %v127_v48 = vadd.f32 %v248_v46, %v126_v47 }
  0xb3   :  { %v129_v49 = vmax.f32 %v127_v48, 0.0 }
  0xb5   :  { %166 = vmatmul.f32.vlgmr.msra.gmra.mxu1 %v129_v49 }
 0x132   :  { %v167_v54 = vpop.f32.mrf.mxu1 }
 0x133   :  { %v168_v55 = vadd.f32 %v249_v53, %v167_v54 }
 0x135   :  { %v170_v56 = vmax.f32 %v168_v55, 0.0 }
 0x137   :  { %207 = vmatmul.f32.vlgmr.msra.gmra.mxu2 %v170_v56 }
 0x1ba   :  { %v208_v58 = vpop.f32.mrf.mxu2 }
 0x1bb   :  { %v209_v59 = vadd.f32 %v250_v57, %v208_v58 }
 0x1bd   :  { %211 = vmax.xlane.f32.xlu0 %v209_v59 }
 0x230   :  { %v212_v60 = vpop.xlane.xlu0 %211 }
 0x231   :  { %v213_v61 = vsub.f32 %v209_v59, %v212_v60 }
 0x233   :  { %v214_v62 = vmul.f32 1.442695, %v213_v61 }
 0x235   :  { %251 = vpow2.f32 %v214_v62 }
 0x23b   :  { %v252_v63 = vpop.eup %251 }
 0x23c   :  { %216 = vadd.xlane.f32.xlu0 %v252_v63 }
 0x2af   :  { %v217_v0 = vpop.xlane.xlu0 %216 }
 0x2b0   :  { %253 = vlog2.f32 %v217_v0 }
 0x2b6   :  { %v254_v1 = vpop.eup %253 }
 0x2b7   :  { %v219_v2 = vmul.f32 0.6931472, %v254_v1 }
 0x2b9   :  { %v220_v3 = vsub.f32 %v213_v61, %v219_v2 }
 0x2bb   :  { %221 = vst [vmem:[#allocation10] sm:$0xff] %v220_v3 }
 0x2bc   :  { %232 = dma.vmem_to_hbm [thread:$0]  %s228_s24, 128, %s230_s27, [#allocation4]  }
 0x2bd   :  { %381 = dma.done.wait [#allocation4], 128  }
 0x2be   :  { %382 = vsyncadd [#allocation4], 4294967168 }
 0x2bf   :  { %237 = vsyncpa [#allocation3], 1 }
 0x2c0   :  { %238 = vsyncpa [#allocation6], 1 }
 0x2c1   :  { %239 = vsyncpa [#allocation9], 1 }
 0x2c2   :  { %240 = vsyncpa [#allocation4], 1 }

</bundles_post_ra>
